<compile_context>
chip_gen: v7x
topology: tpu7x:2x2x1
jax: 0.10.0
libtpu: 0.0.40
codegen_flags: <defaults>
</compile_context>

<pallas_src>
import functools

import jax
import jax.numpy as jnp
from jax.experimental import pallas as pl
from jax.experimental.pallas import tpu as pltpu


_LANE = 128
_VMEM = pl.BlockSpec(memory_space=pltpu.MemorySpace.VMEM)
_SMEM = pl.BlockSpec(memory_space=pltpu.MemorySpace.SMEM)


def _ceil_lane(d):
    return ((d + _LANE - 1) // _LANE) * _LANE


def _pad_lane(a, target=None):
    """Zero-pad the last dim of `a` to a multiple of 128 (or to `target`)."""
    d = a.shape[-1]
    t = _ceil_lane(d) if target is None else target
    if t == d:
        return a
    pad = [(0, 0)] * (a.ndim - 1) + [(0, t - d)]
    return jnp.pad(a, pad)


def _pad_rows(a, target):
    """Zero-pad the first dim of a 2-D array to `target` rows."""
    r = a.shape[0]
    if target == r:
        return a
    return jnp.pad(a, ((0, target - r), (0, 0)))


# ---------------------------------------------------------------------------
# Fully fused forward kernel: all GIN layers + readout in one launch.
# Ref order: eps(SMEM), adj, x, graph_pool,
#            per layer l: [w_0..w_{M-1}, b_0..b_{M-1}, bn_g_0..bn_g_{M-2},
#                          bn_b_0..bn_b_{M-2}, gin_gamma, gin_beta],
#            pred_w_0..pred_w_{L-1}, pred_b_0..pred_b_{L-1}, out
# ---------------------------------------------------------------------------
def _make_gin_forward_kernel(num_layers, num_mlp_layers):
    L, M = num_layers, num_mlp_layers
    per_layer = 2 * M + 2 * (M - 1) + 2

    def kernel(eps_ref, adj_ref, x_ref, pool_ref, *refs):
        layer_refs = refs[: (L - 1) * per_layer]
        pred_w = refs[(L - 1) * per_layer: (L - 1) * per_layer + L]
        pred_b = refs[(L - 1) * per_layer + L: (L - 1) * per_layer + 2 * L]
        out_ref = refs[-1]

        def bn_relu(x, gamma_ref, beta_ref):
            # torch BatchNorm1d training-mode batch statistics (biased variance).
            # Exact on padded columns because gamma/beta pads are zero.
            mean = jnp.mean(x, axis=0, keepdims=True)
            diff = x - mean
            var = jnp.mean(diff * diff, axis=0, keepdims=True)
            y = diff * jax.lax.rsqrt(var + 1e-5) * gamma_ref[...] + beta_ref[...]
            return jnp.maximum(y, 0.0)

        adj = adj_ref[...]
        pool = pool_ref[...]
        h = x_ref[...]

        # Readout accumulator; all L bias adds hoisted into a single term.
        bias_total = pred_b[0][...]
        for l in range(1, L):
            bias_total = bias_total + pred_b[l][...]
        acc = bias_total + jnp.dot(
            jnp.dot(pool, h, preferred_element_type=jnp.float32),
            pred_w[0][...], preferred_element_type=jnp.float32)

        for layer in range(L - 1):
            base = layer * per_layer
            ws = layer_refs[base: base + M]
            bs = layer_refs[base + M: base + 2 * M]
            gs = layer_refs[base + 2 * M: base + 3 * M - 1]
            bts = layer_refs[base + 3 * M - 1: base + 4 * M - 2]
            gin_gamma = layer_refs[base + 4 * M - 2]
            gin_beta = layer_refs[base + 4 * M - 1]

            # Neighbor aggregation on the raw 0/1 adjacency + f32 (1+eps) self-term.
            t = jnp.dot(adj, h, preferred_element_type=jnp.float32)
            t = t + (1.0 + eps_ref[layer]) * h

            # MLP hidden layers (linear + BN + ReLU), all resident in VMEM.
            for i in range(M - 1):
                t = jnp.dot(t, ws[i][...], preferred_element_type=jnp.float32) + bs[i][...]
                t = bn_relu(t, gs[i], bts[i])

            # MLP output layer + GIN-level BN + ReLU.
            t = jnp.dot(t, ws[M - 1][...], preferred_element_type=jnp.float32) + bs[M - 1][...]
            h = bn_relu(t, gin_gamma, gin_beta)

            # Accumulate this layer's readout contribution (pool-first: G << N).
            pooled = jnp.dot(pool, h, preferred_element_type=jnp.float32)
            acc = acc + jnp.dot(pooled, pred_w[layer + 1][...],
                                preferred_element_type=jnp.float32)

        out_ref[...] = acc

    return kernel


# ---------------------------------------------------------------------------
# Parameter construction (deterministic, mirrors GIN.__init__ logical shapes)
# ---------------------------------------------------------------------------
def init_params(key, num_layers, num_mlp_layers, input_dim, hidden_dim, output_dim):
    params = {}
    params["eps"] = jnp.zeros((num_layers - 1,), jnp.float32)  # nn.Parameter(zeros)

    mlps = []
    bn_gamma, bn_beta = [], []
    for layer in range(num_layers - 1):
        in_dim = input_dim if layer == 0 else hidden_dim
        dims = [in_dim] + [hidden_dim] * (num_mlp_layers - 1) + [hidden_dim]
        ws, bs, gs, betas = [], [], [], []
        for i in range(num_mlp_layers):
            key, kw, kb = jax.random.split(key, 3)
            ws.append(0.1 * jax.random.normal(kw, (dims[i], dims[i + 1]), jnp.float32))
            bs.append(0.1 * jax.random.normal(kb, (1, dims[i + 1]), jnp.float32))
            if i < num_mlp_layers - 1:  # inner MLP batch norms
                gs.append(jnp.ones((1, dims[i + 1]), jnp.float32))
                betas.append(jnp.zeros((1, dims[i + 1]), jnp.float32))
        mlps.append({"w": ws, "b": bs, "bn_gamma": gs, "bn_beta": betas})
        # GIN-level batch norms
        bn_gamma.append(jnp.ones((1, hidden_dim), jnp.float32))
        bn_beta.append(jnp.zeros((1, hidden_dim), jnp.float32))
    params["mlps"] = mlps
    params["bn_gamma"] = bn_gamma
    params["bn_beta"] = bn_beta

    pred_w, pred_b = [], []
    for layer in range(num_layers):
        in_dim = input_dim if layer == 0 else hidden_dim
        key, kw, kb = jax.random.split(key, 3)
        pred_w.append(0.1 * jax.random.normal(kw, (in_dim, output_dim), jnp.float32))
        pred_b.append(0.1 * jax.random.normal(kb, (1, output_dim), jnp.float32))
    params["pred_w"] = pred_w
    params["pred_b"] = pred_b
    return params


# ---------------------------------------------------------------------------
# Forward (learn_eps=True, neighbor_pooling_type='sum', graph_pooling_type='sum')
# ---------------------------------------------------------------------------
def gin_forward(x, adj, graph_pool, params, num_layers, num_mlp_layers):
    output_dim = params["pred_w"][0].shape[1]
    op = _ceil_lane(output_dim)
    g = graph_pool.shape[0]

    # Lane-dense zero padding of the feature axis (exact: padded columns stay 0).
    h0 = _pad_lane(x)
    eps = params["eps"].astype(jnp.float32)

    # Flatten padded parameters in the exact order the kernel unpacks them.
    flat = []
    for layer in range(num_layers - 1):
        mlp = params["mlps"][layer]
        flat += [_pad_rows(_pad_lane(w), _ceil_lane(w.shape[0])) for w in mlp["w"]]
        flat += [_pad_lane(b) for b in mlp["b"]]
        flat += [_pad_lane(gg) for gg in mlp["bn_gamma"]]
        flat += [_pad_lane(bb) for bb in mlp["bn_beta"]]
        flat.append(_pad_lane(params["bn_gamma"][layer]))
        flat.append(_pad_lane(params["bn_beta"][layer]))
    for layer in range(num_layers):
        w = params["pred_w"][layer]
        flat.append(_pad_rows(_pad_lane(w, op), _ceil_lane(w.shape[0])))
    for layer in range(num_layers):
        flat.append(_pad_lane(params["pred_b"][layer], op))

    operands = [eps, adj.astype(jnp.float32), h0, graph_pool.astype(jnp.float32)] + flat

    # Size the scoped VMEM limit from the actual resident footprint (+ headroom).
    footprint = sum(int(a.size) * a.dtype.itemsize for a in operands) + g * op * 4
    vmem_limit = int(min(100 * (1 << 20), max(16 * (1 << 20), 2 * footprint + (4 << 20))))

    score = pl.pallas_call(
        _make_gin_forward_kernel(num_layers, num_mlp_layers),
        out_shape=jax.ShapeDtypeStruct((g, op), jnp.float32),
        in_specs=[_SMEM] + [_VMEM] * (len(operands) - 1),
        out_specs=_VMEM,
        compiler_params=pltpu.CompilerParams(vmem_limit_bytes=vmem_limit),
    )(*operands)

    # TODO(synk): F.dropout(final_dropout) only acts in training mode; eval semantics = identity.
    return score[:, :output_dim]


# ---------------------------------------------------------------------------
# Driver
# ---------------------------------------------------------------------------
if __name__ == "__main__":
    num_layers = 3
    num_mlp_layers = 2
    input_dim = 8
    hidden_dim = 32
    output_dim = 4
    num_graphs = 2
    nodes_per_graph = 8
    n_nodes = num_graphs * nodes_per_graph

    key = jax.random.PRNGKey(0)
    key, kx = jax.random.split(key)
    x = jax.random.normal(kx, (n_nodes, input_dim), jnp.float32)

    # Dense 0/1 adjacency: an undirected ring inside each graph (no self loops; learn_eps=True).
    adj = jnp.zeros((n_nodes, n_nodes), jnp.float32)
    for gidx in range(num_graphs):
        off = gidx * nodes_per_graph
        for i in range(nodes_per_graph):
            j = (i + 1) % nodes_per_graph
            adj = adj.at[off + i, off + j].set(1.0)
            adj = adj.at[off + j, off + i].set(1.0)

    # Graph pooling matrix: sum pooling -> ones over each graph's node block.
    graph_pool = jnp.zeros((num_graphs, n_nodes), jnp.float32)
    for gidx in range(num_graphs):
        graph_pool = graph_pool.at[
            gidx, gidx * nodes_per_graph:(gidx + 1) * nodes_per_graph].set(1.0)

    params = init_params(key, num_layers, num_mlp_layers, input_dim, hidden_dim, output_dim)

    fwd = jax.jit(functools.partial(
        gin_forward, num_layers=num_layers, num_mlp_layers=num_mlp_layers))
    score = fwd(x, adj, graph_pool, params)
    score = jax.block_until_ready(score)
    assert score.shape == (num_graphs, output_dim)
    assert bool(jnp.all(jnp.isfinite(score)))
    print("KERNEL_OK")
</pallas_src>

<mosaic_0001>
module attributes {stable_mosaic.version = 11 : i64} {
  func.func @kernel(%arg0: memref<2xf32, #tpu.memory_space<smem>>, %arg1: memref<16x16xf32, #tpu.memory_space<vmem>>, %arg2: memref<16x128xf32, #tpu.memory_space<vmem>>, %arg3: memref<2x16xf32, #tpu.memory_space<vmem>>, %arg4: memref<128x128xf32, #tpu.memory_space<vmem>>, %arg5: memref<128x128xf32, #tpu.memory_space<vmem>>, %arg6: memref<1x128xf32, #tpu.memory_space<vmem>>, %arg7: memref<1x128xf32, #tpu.memory_space<vmem>>, %arg8: memref<1x128xf32, #tpu.memory_space<vmem>>, %arg9: memref<1x128xf32, #tpu.memory_space<vmem>>, %arg10: memref<1x128xf32, #tpu.memory_space<vmem>>, %arg11: memref<1x128xf32, #tpu.memory_space<vmem>>, %arg12: memref<128x128xf32, #tpu.memory_space<vmem>>, %arg13: memref<128x128xf32, #tpu.memory_space<vmem>>, %arg14: memref<1x128xf32, #tpu.memory_space<vmem>>, %arg15: memref<1x128xf32, #tpu.memory_space<vmem>>, %arg16: memref<1x128xf32, #tpu.memory_space<vmem>>, %arg17: memref<1x128xf32, #tpu.memory_space<vmem>>, %arg18: memref<1x128xf32, #tpu.memory_space<vmem>>, %arg19: memref<1x128xf32, #tpu.memory_space<vmem>>, %arg20: memref<128x128xf32, #tpu.memory_space<vmem>>, %arg21: memref<128x128xf32, #tpu.memory_space<vmem>>, %arg22: memref<128x128xf32, #tpu.memory_space<vmem>>, %arg23: memref<1x128xf32, #tpu.memory_space<vmem>>, %arg24: memref<1x128xf32, #tpu.memory_space<vmem>>, %arg25: memref<1x128xf32, #tpu.memory_space<vmem>>, %arg26: memref<2x128xf32, #tpu.memory_space<vmem>>) attributes {dimension_semantics = [], scalar_prefetch = 0 : i64, scratch_operands = 0 : i64, tpu.core_type = #tpu.core_type<tc>} {
    %c0 = arith.constant 0 : index
    %c0_0 = arith.constant 0 : index
    %0 = vector.load %arg1[%c0, %c0_0] : memref<16x16xf32, #tpu.memory_space<vmem>>, vector<16x16xf32>
    %c0_1 = arith.constant 0 : index
    %c0_2 = arith.constant 0 : index
    %1 = vector.load %arg3[%c0_1, %c0_2] : memref<2x16xf32, #tpu.memory_space<vmem>>, vector<2x16xf32>
    %c0_3 = arith.constant 0 : index
    %c0_4 = arith.constant 0 : index
    %2 = vector.load %arg2[%c0_3, %c0_4] : memref<16x128xf32, #tpu.memory_space<vmem>>, vector<16x128xf32>
    %c0_5 = arith.constant 0 : index
    %c0_6 = arith.constant 0 : index
    %3 = vector.load %arg23[%c0_5, %c0_6] : memref<1x128xf32, #tpu.memory_space<vmem>>, vector<1x128xf32>
    %c0_7 = arith.constant 0 : index
    %c0_8 = arith.constant 0 : index
    %4 = vector.load %arg24[%c0_7, %c0_8] : memref<1x128xf32, #tpu.memory_space<vmem>>, vector<1x128xf32>
    %5 = arith.addf %3, %4 : vector<1x128xf32>
    %c0_9 = arith.constant 0 : index
    %c0_10 = arith.constant 0 : index
    %6 = vector.load %arg25[%c0_9, %c0_10] : memref<1x128xf32, #tpu.memory_space<vmem>>, vector<1x128xf32>
    %7 = arith.addf %5, %6 : vector<1x128xf32>
    %cst = arith.constant dense<0.000000e+00> : vector<2x128xf32>
    %8 = tpu.matmul %1, %2, %cst {dimension_numbers = #tpu.dot_dimension_numbers<[1], [0], [0], [1], [0, 0, 1, 1], [], []>} : vector<2x16xf32>, vector<16x128xf32>, vector<2x128xf32> -> vector<2x128xf32>
    %c0_11 = arith.constant 0 : index
    %c0_12 = arith.constant 0 : index
    %9 = vector.load %arg20[%c0_11, %c0_12] : memref<128x128xf32, #tpu.memory_space<vmem>>, vector<128x128xf32>
    %cst_13 = arith.constant dense<0.000000e+00> : vector<2x128xf32>
    %10 = tpu.matmul %8, %9, %cst_13 {dimension_numbers = #tpu.dot_dimension_numbers<[1], [0], [0], [1], [0, 0, 1, 1], [], []>} : vector<2x128xf32>, vector<128x128xf32>, vector<2x128xf32> -> vector<2x128xf32>
    %11 = vector.broadcast %7 : vector<1x128xf32> to vector<2x128xf32>
    %12 = arith.addf %11, %10 : vector<2x128xf32>
    %cst_14 = arith.constant dense<0.000000e+00> : vector<16x128xf32>
    %13 = tpu.matmul %0, %2, %cst_14 {dimension_numbers = #tpu.dot_dimension_numbers<[1], [0], [0], [1], [0, 0, 1, 1], [], []>} : vector<16x16xf32>, vector<16x128xf32>, vector<16x128xf32> -> vector<16x128xf32>
    %c0_15 = arith.constant 0 : index
    %14 = memref.load %arg0[%c0_15] : memref<2xf32, #tpu.memory_space<smem>>
    %cst_16 = arith.constant 1.000000e+00 : f32
    %15 = arith.addf %cst_16, %14 : f32
    %16 = vector.broadcast %15 : f32 to vector<16x128xf32>
    %17 = arith.mulf %16, %2 : vector<16x128xf32>
    %18 = arith.addf %13, %17 : vector<16x128xf32>
    %c0_17 = arith.constant 0 : index
    %c0_18 = arith.constant 0 : index
    %19 = vector.load %arg4[%c0_17, %c0_18] : memref<128x128xf32, #tpu.memory_space<vmem>>, vector<128x128xf32>
    %cst_19 = arith.constant dense<0.000000e+00> : vector<16x128xf32>
    %20 = tpu.matmul %18, %19, %cst_19 {dimension_numbers = #tpu.dot_dimension_numbers<[1], [0], [0], [1], [0, 0, 1, 1], [], []>} : vector<16x128xf32>, vector<128x128xf32>, vector<16x128xf32> -> vector<16x128xf32>
    %c0_20 = arith.constant 0 : index
    %c0_21 = arith.constant 0 : index
    %21 = vector.load %arg6[%c0_20, %c0_21] : memref<1x128xf32, #tpu.memory_space<vmem>>, vector<1x128xf32>
    %22 = vector.broadcast %21 : vector<1x128xf32> to vector<16x128xf32>
    %23 = arith.addf %20, %22 : vector<16x128xf32>
    %cst_22 = arith.constant dense<0.000000e+00> : vector<128xf32>
    %24 = vector.multi_reduction <add>, %23, %cst_22 [0] : vector<16x128xf32> to vector<128xf32>
    %25 = vector.shape_cast %24 : vector<128xf32> to vector<1x128xf32>
    %cst_23 = arith.constant 1.600000e+01 : f32
    %26 = vector.broadcast %cst_23 : f32 to vector<1x128xf32>
    %27 = arith.divf %25, %26 : vector<1x128xf32>
    %28 = vector.broadcast %27 : vector<1x128xf32> to vector<16x128xf32>
    %29 = arith.subf %23, %28 : vector<16x128xf32>
    %30 = arith.mulf %29, %29 : vector<16x128xf32>
    %cst_24 = arith.constant dense<0.000000e+00> : vector<128xf32>
    %31 = vector.multi_reduction <add>, %30, %cst_24 [0] : vector<16x128xf32> to vector<128xf32>
    %32 = vector.shape_cast %31 : vector<128xf32> to vector<1x128xf32>
    %cst_25 = arith.constant 1.600000e+01 : f32
    %33 = vector.broadcast %cst_25 : f32 to vector<1x128xf32>
    %34 = arith.divf %32, %33 : vector<1x128xf32>
    %cst_26 = arith.constant 9.99999974E-6 : f32
    %35 = vector.broadcast %cst_26 : f32 to vector<1x128xf32>
    %36 = arith.addf %34, %35 : vector<1x128xf32>
    %37 = math.rsqrt %36 : vector<1x128xf32>
    %38 = vector.broadcast %37 : vector<1x128xf32> to vector<16x128xf32>
    %39 = arith.mulf %29, %38 : vector<16x128xf32>
    %c0_27 = arith.constant 0 : index
    %c0_28 = arith.constant 0 : index
    %40 = vector.load %arg8[%c0_27, %c0_28] : memref<1x128xf32, #tpu.memory_space<vmem>>, vector<1x128xf32>
    %41 = vector.broadcast %40 : vector<1x128xf32> to vector<16x128xf32>
    %42 = arith.mulf %39, %41 : vector<16x128xf32>
    %c0_29 = arith.constant 0 : index
    %c0_30 = arith.constant 0 : index
    %43 = vector.load %arg9[%c0_29, %c0_30] : memref<1x128xf32, #tpu.memory_space<vmem>>, vector<1x128xf32>
    %44 = vector.broadcast %43 : vector<1x128xf32> to vector<16x128xf32>
    %45 = arith.addf %42, %44 : vector<16x128xf32>
    %cst_31 = arith.constant 0.000000e+00 : f32
    %46 = vector.broadcast %cst_31 : f32 to vector<16x128xf32>
    %47 = arith.maximumf %45, %46 : vector<16x128xf32>
    %c0_32 = arith.constant 0 : index
    %c0_33 = arith.constant 0 : index
    %48 = vector.load %arg5[%c0_32, %c0_33] : memref<128x128xf32, #tpu.memory_space<vmem>>, vector<128x128xf32>
    %cst_34 = arith.constant dense<0.000000e+00> : vector<16x128xf32>
    %49 = tpu.matmul %47, %48, %cst_34 {dimension_numbers = #tpu.dot_dimension_numbers<[1], [0], [0], [1], [0, 0, 1, 1], [], []>} : vector<16x128xf32>, vector<128x128xf32>, vector<16x128xf32> -> vector<16x128xf32>
    %c0_35 = arith.constant 0 : index
    %c0_36 = arith.constant 0 : index
    %50 = vector.load %arg7[%c0_35, %c0_36] : memref<1x128xf32, #tpu.memory_space<vmem>>, vector<1x128xf32>
    %51 = vector.broadcast %50 : vector<1x128xf32> to vector<16x128xf32>
    %52 = arith.addf %49, %51 : vector<16x128xf32>
    %cst_37 = arith.constant dense<0.000000e+00> : vector<128xf32>
    %53 = vector.multi_reduction <add>, %52, %cst_37 [0] : vector<16x128xf32> to vector<128xf32>
    %54 = vector.shape_cast %53 : vector<128xf32> to vector<1x128xf32>
    %cst_38 = arith.constant 1.600000e+01 : f32
    %55 = vector.broadcast %cst_38 : f32 to vector<1x128xf32>
    %56 = arith.divf %54, %55 : vector<1x128xf32>
    %57 = vector.broadcast %56 : vector<1x128xf32> to vector<16x128xf32>
    %58 = arith.subf %52, %57 : vector<16x128xf32>
    %59 = arith.mulf %58, %58 : vector<16x128xf32>
    %cst_39 = arith.constant dense<0.000000e+00> : vector<128xf32>
    %60 = vector.multi_reduction <add>, %59, %cst_39 [0] : vector<16x128xf32> to vector<128xf32>
    %61 = vector.shape_cast %60 : vector<128xf32> to vector<1x128xf32>
    %cst_40 = arith.constant 1.600000e+01 : f32
    %62 = vector.broadcast %cst_40 : f32 to vector<1x128xf32>
    %63 = arith.divf %61, %62 : vector<1x128xf32>
    %cst_41 = arith.constant 9.99999974E-6 : f32
    %64 = vector.broadcast %cst_41 : f32 to vector<1x128xf32>
    %65 = arith.addf %63, %64 : vector<1x128xf32>
    %66 = math.rsqrt %65 : vector<1x128xf32>
    %67 = vector.broadcast %66 : vector<1x128xf32> to vector<16x128xf32>
    %68 = arith.mulf %58, %67 : vector<16x128xf32>
    %c0_42 = arith.constant 0 : index
    %c0_43 = arith.constant 0 : index
    %69 = vector.load %arg10[%c0_42, %c0_43] : memref<1x128xf32, #tpu.memory_space<vmem>>, vector<1x128xf32>
    %70 = vector.broadcast %69 : vector<1x128xf32> to vector<16x128xf32>
    %71 = arith.mulf %68, %70 : vector<16x128xf32>
    %c0_44 = arith.constant 0 : index
    %c0_45 = arith.constant 0 : index
    %72 = vector.load %arg11[%c0_44, %c0_45] : memref<1x128xf32, #tpu.memory_space<vmem>>, vector<1x128xf32>
    %73 = vector.broadcast %72 : vector<1x128xf32> to vector<16x128xf32>
    %74 = arith.addf %71, %73 : vector<16x128xf32>
    %cst_46 = arith.constant 0.000000e+00 : f32
    %75 = vector.broadcast %cst_46 : f32 to vector<16x128xf32>
    %76 = arith.maximumf %74, %75 : vector<16x128xf32>
    %cst_47 = arith.constant dense<0.000000e+00> : vector<2x128xf32>
    %77 = tpu.matmul %1, %76, %cst_47 {dimension_numbers = #tpu.dot_dimension_numbers<[1], [0], [0], [1], [0, 0, 1, 1], [], []>} : vector<2x16xf32>, vector<16x128xf32>, vector<2x128xf32> -> vector<2x128xf32>
    %c0_48 = arith.constant 0 : index
    %c0_49 = arith.constant 0 : index
    %78 = vector.load %arg21[%c0_48, %c0_49] : memref<128x128xf32, #tpu.memory_space<vmem>>, vector<128x128xf32>
    %cst_50 = arith.constant dense<0.000000e+00> : vector<2x128xf32>
    %79 = tpu.matmul %77, %78, %cst_50 {dimension_numbers = #tpu.dot_dimension_numbers<[1], [0], [0], [1], [0, 0, 1, 1], [], []>} : vector<2x128xf32>, vector<128x128xf32>, vector<2x128xf32> -> vector<2x128xf32>
    %80 = arith.addf %12, %79 : vector<2x128xf32>
    %cst_51 = arith.constant dense<0.000000e+00> : vector<16x128xf32>
    %81 = tpu.matmul %0, %76, %cst_51 {dimension_numbers = #tpu.dot_dimension_numbers<[1], [0], [0], [1], [0, 0, 1, 1], [], []>} : vector<16x16xf32>, vector<16x128xf32>, vector<16x128xf32> -> vector<16x128xf32>
    %c1 = arith.constant 1 : index
    %82 = memref.load %arg0[%c1] : memref<2xf32, #tpu.memory_space<smem>>
    %cst_52 = arith.constant 1.000000e+00 : f32
    %83 = arith.addf %cst_52, %82 : f32
    %84 = vector.broadcast %83 : f32 to vector<16x128xf32>
    %85 = arith.mulf %84, %76 : vector<16x128xf32>
    %86 = arith.addf %81, %85 : vector<16x128xf32>
    %c0_53 = arith.constant 0 : index
    %c0_54 = arith.constant 0 : index
    %87 = vector.load %arg12[%c0_53, %c0_54] : memref<128x128xf32, #tpu.memory_space<vmem>>, vector<128x128xf32>
    %cst_55 = arith.constant dense<0.000000e+00> : vector<16x128xf32>
    %88 = tpu.matmul %86, %87, %cst_55 {dimension_numbers = #tpu.dot_dimension_numbers<[1], [0], [0], [1], [0, 0, 1, 1], [], []>} : vector<16x128xf32>, vector<128x128xf32>, vector<16x128xf32> -> vector<16x128xf32>
    %c0_56 = arith.constant 0 : index
    %c0_57 = arith.constant 0 : index
    %89 = vector.load %arg14[%c0_56, %c0_57] : memref<1x128xf32, #tpu.memory_space<vmem>>, vector<1x128xf32>
    %90 = vector.broadcast %89 : vector<1x128xf32> to vector<16x128xf32>
    %91 = arith.addf %88, %90 : vector<16x128xf32>
    %cst_58 = arith.constant dense<0.000000e+00> : vector<128xf32>
    %92 = vector.multi_reduction <add>, %91, %cst_58 [0] : vector<16x128xf32> to vector<128xf32>
    %93 = vector.shape_cast %92 : vector<128xf32> to vector<1x128xf32>
    %cst_59 = arith.constant 1.600000e+01 : f32
    %94 = vector.broadcast %cst_59 : f32 to vector<1x128xf32>
    %95 = arith.divf %93, %94 : vector<1x128xf32>
    %96 = vector.broadcast %95 : vector<1x128xf32> to vector<16x128xf32>
    %97 = arith.subf %91, %96 : vector<16x128xf32>
    %98 = arith.mulf %97, %97 : vector<16x128xf32>
    %cst_60 = arith.constant dense<0.000000e+00> : vector<128xf32>
    %99 = vector.multi_reduction <add>, %98, %cst_60 [0] : vector<16x128xf32> to vector<128xf32>
    %100 = vector.shape_cast %99 : vector<128xf32> to vector<1x128xf32>
    %cst_61 = arith.constant 1.600000e+01 : f32
    %101 = vector.broadcast %cst_61 : f32 to vector<1x128xf32>
    %102 = arith.divf %100, %101 : vector<1x128xf32>
    %cst_62 = arith.constant 9.99999974E-6 : f32
    %103 = vector.broadcast %cst_62 : f32 to vector<1x128xf32>
    %104 = arith.addf %102, %103 : vector<1x128xf32>
    %105 = math.rsqrt %104 : vector<1x128xf32>
    %106 = vector.broadcast %105 : vector<1x128xf32> to vector<16x128xf32>
    %107 = arith.mulf %97, %106 : vector<16x128xf32>
    %c0_63 = arith.constant 0 : index
    %c0_64 = arith.constant 0 : index
    %108 = vector.load %arg16[%c0_63, %c0_64] : memref<1x128xf32, #tpu.memory_space<vmem>>, vector<1x128xf32>
    %109 = vector.broadcast %108 : vector<1x128xf32> to vector<16x128xf32>
    %110 = arith.mulf %107, %109 : vector<16x128xf32>
    %c0_65 = arith.constant 0 : index
    %c0_66 = arith.constant 0 : index
    %111 = vector.load %arg17[%c0_65, %c0_66] : memref<1x128xf32, #tpu.memory_space<vmem>>, vector<1x128xf32>
    %112 = vector.broadcast %111 : vector<1x128xf32> to vector<16x128xf32>
    %113 = arith.addf %110, %112 : vector<16x128xf32>
    %cst_67 = arith.constant 0.000000e+00 : f32
    %114 = vector.broadcast %cst_67 : f32 to vector<16x128xf32>
    %115 = arith.maximumf %113, %114 : vector<16x128xf32>
    %c0_68 = arith.constant 0 : index
    %c0_69 = arith.constant 0 : index
    %116 = vector.load %arg13[%c0_68, %c0_69] : memref<128x128xf32, #tpu.memory_space<vmem>>, vector<128x128xf32>
    %cst_70 = arith.constant dense<0.000000e+00> : vector<16x128xf32>
    %117 = tpu.matmul %115, %116, %cst_70 {dimension_numbers = #tpu.dot_dimension_numbers<[1], [0], [0], [1], [0, 0, 1, 1], [], []>} : vector<16x128xf32>, vector<128x128xf32>, vector<16x128xf32> -> vector<16x128xf32>
    %c0_71 = arith.constant 0 : index
    %c0_72 = arith.constant 0 : index
    %118 = vector.load %arg15[%c0_71, %c0_72] : memref<1x128xf32, #tpu.memory_space<vmem>>, vector<1x128xf32>
    %119 = vector.broadcast %118 : vector<1x128xf32> to vector<16x128xf32>
    %120 = arith.addf %117, %119 : vector<16x128xf32>
    %cst_73 = arith.constant dense<0.000000e+00> : vector<128xf32>
    %121 = vector.multi_reduction <add>, %120, %cst_73 [0] : vector<16x128xf32> to vector<128xf32>
    %122 = vector.shape_cast %121 : vector<128xf32> to vector<1x128xf32>
    %cst_74 = arith.constant 1.600000e+01 : f32
    %123 = vector.broadcast %cst_74 : f32 to vector<1x128xf32>
    %124 = arith.divf %122, %123 : vector<1x128xf32>
    %125 = vector.broadcast %124 : vector<1x128xf32> to vector<16x128xf32>
    %126 = arith.subf %120, %125 : vector<16x128xf32>
    %127 = arith.mulf %126, %126 : vector<16x128xf32>
    %cst_75 = arith.constant dense<0.000000e+00> : vector<128xf32>
    %128 = vector.multi_reduction <add>, %127, %cst_75 [0] : vector<16x128xf32> to vector<128xf32>
    %129 = vector.shape_cast %128 : vector<128xf32> to vector<1x128xf32>
    %cst_76 = arith.constant 1.600000e+01 : f32
    %130 = vector.broadcast %cst_76 : f32 to vector<1x128xf32>
    %131 = arith.divf %129, %130 : vector<1x128xf32>
    %cst_77 = arith.constant 9.99999974E-6 : f32
    %132 = vector.broadcast %cst_77 : f32 to vector<1x128xf32>
    %133 = arith.addf %131, %132 : vector<1x128xf32>
    %134 = math.rsqrt %133 : vector<1x128xf32>
    %135 = vector.broadcast %134 : vector<1x128xf32> to vector<16x128xf32>
    %136 = arith.mulf %126, %135 : vector<16x128xf32>
    %c0_78 = arith.constant 0 : index
    %c0_79 = arith.constant 0 : index
    %137 = vector.load %arg18[%c0_78, %c0_79] : memref<1x128xf32, #tpu.memory_space<vmem>>, vector<1x128xf32>
    %138 = vector.broadcast %137 : vector<1x128xf32> to vector<16x128xf32>
    %139 = arith.mulf %136, %138 : vector<16x128xf32>
    %c0_80 = arith.constant 0 : index
    %c0_81 = arith.constant 0 : index
    %140 = vector.load %arg19[%c0_80, %c0_81] : memref<1x128xf32, #tpu.memory_space<vmem>>, vector<1x128xf32>
    %141 = vector.broadcast %140 : vector<1x128xf32> to vector<16x128xf32>
    %142 = arith.addf %139, %141 : vector<16x128xf32>
    %cst_82 = arith.constant 0.000000e+00 : f32
    %143 = vector.broadcast %cst_82 : f32 to vector<16x128xf32>
    %144 = arith.maximumf %142, %143 : vector<16x128xf32>
    %cst_83 = arith.constant dense<0.000000e+00> : vector<2x128xf32>
    %145 = tpu.matmul %1, %144, %cst_83 {dimension_numbers = #tpu.dot_dimension_numbers<[1], [0], [0], [1], [0, 0, 1, 1], [], []>} : vector<2x16xf32>, vector<16x128xf32>, vector<2x128xf32> -> vector<2x128xf32>
    %c0_84 = arith.constant 0 : index
    %c0_85 = arith.constant 0 : index
    %146 = vector.load %arg22[%c0_84, %c0_85] : memref<128x128xf32, #tpu.memory_space<vmem>>, vector<128x128xf32>
    %cst_86 = arith.constant dense<0.000000e+00> : vector<2x128xf32>
    %147 = tpu.matmul %145, %146, %cst_86 {dimension_numbers = #tpu.dot_dimension_numbers<[1], [0], [0], [1], [0, 0, 1, 1], [], []>} : vector<2x128xf32>, vector<128x128xf32>, vector<2x128xf32> -> vector<2x128xf32>
    %148 = arith.addf %80, %147 : vector<2x128xf32>
    %c0_87 = arith.constant 0 : index
    %c0_88 = arith.constant 0 : index
    %149 = vector.load %arg26[%c0_87, %c0_88] : memref<2x128xf32, #tpu.memory_space<vmem>>, vector<2x128xf32>
    tpu.vector_store %arg26[%c0_87, %c0_88], %148 {strides = array<i32>} : memref<2x128xf32, #tpu.memory_space<vmem>>, vector<2x128xf32>,
    return
  }
}

</mosaic_0001>

<bundles_post_ra>
// kernel: gin_forward.1
= control target key start
LH: loop header
LB: loop body
LE: loop exit
PB: predicated region body
PF: predicated region fallthrough
CT: control target
= control target key end

     0   :  { %s2670_s0 = inlined_call_operand.vmem [shape: f32[2], index: 0, kind: input, shape index: {}]   ;;  %s2671_s1 = inlined_call_operand.vmem [shape: f32[16,16], index: 1, kind: input, shape index: {}]   ;;  %s2672_s2 = inlined_call_operand.vmem [shape: f32[16,128], index: 2, kind: input, shape index: {}]   ;;  %s2673_s3 = inlined_call_operand.vmem [shape: f32[2,16], index: 3, kind: input, shape index: {}]   ;;  %s2674_s4 = inlined_call_operand.vmem [shape: f32[128,128], index: 4, kind: input, shape index: {}]   ;;  %s2675_s5 = inlined_call_operand.vmem [shape: f32[128,128], index: 5, kind: input, shape index: {}]   ;;  %s2676_s6 = inlined_call_operand.vmem [shape: f32[1,128], index: 6, kind: input, shape index: {}]   ;;  %s2677_s7 = inlined_call_operand.vmem [shape: f32[1,128], index: 7, kind: input, shape index: {}]   ;;  %s2678_s8 = inlined_call_operand.vmem [shape: f32[1,128], index: 8, kind: input, shape index: {}]   ;;  %s2679_s9 = inlined_call_operand.vmem [shape: f32[1,128], index: 9, kind: input, shape index: {}]   ;;  %s2680_s10 = inlined_call_operand.vmem [shape: f32[1,128], index: 10, kind: input, shape index: {}]   ;;  %s2681_s11 = inlined_call_operand.vmem [shape: f32[1,128], index: 11, kind: input, shape index: {}]   ;;  %s2682_s12 = inlined_call_operand.vmem [shape: f32[128,128], index: 12, kind: input, shape index: {}]   ;;  %s2683_s13 = inlined_call_operand.vmem [shape: f32[128,128], index: 13, kind: input, shape index: {}]   ;;  %s2684_s14 = inlined_call_operand.vmem [shape: f32[1,128], index: 14, kind: input, shape index: {}]   ;;  %s2685_s15 = inlined_call_operand.vmem [shape: f32[1,128], index: 15, kind: input, shape index: {}]   ;;  %s2686_s16 = inlined_call_operand.vmem [shape: f32[1,128], index: 16, kind: input, shape index: {}]   ;;  %s2687_s17 = inlined_call_operand.vmem [shape: f32[1,128], index: 17, kind: input, shape index: {}]   ;;  %s2688_s18 = inlined_call_operand.vmem [shape: f32[1,128], index: 18, kind: input, shape index: {}]   ;;  %s2689_s19 = inlined_call_operand.vmem [shape: f32[1,128], index: 19, kind: input, shape index: {}]   ;;  %s2690_s20 = inlined_call_operand.vmem [shape: f32[128,128], index: 20, kind: input, shape index: {}]   ;;  %s2691_s21 = inlined_call_operand.vmem [shape: f32[128,128], index: 21, kind: input, shape index: {}]   ;;  %s2692_s22 = inlined_call_operand.vmem [shape: f32[128,128], index: 22, kind: input, shape index: {}]   ;;  %s2693_s23 = inlined_call_operand.vmem [shape: f32[1,128], index: 23, kind: input, shape index: {}]   ;;  %s2694_s24 = inlined_call_operand.vmem [shape: f32[1,128], index: 24, kind: input, shape index: {}]   ;;  %s2695_s25 = inlined_call_operand.vmem [shape: f32[1,128], index: 25, kind: input, shape index: {}]   ;;  %s2696_s26 = inlined_call_operand.hbm [shape: f32[2,128], index: 26, kind: output, shape index: {}]  }
   0x1   :  { %2701 = sst [smem:[#allocation8_spill]] %s2670_s0 }
   0x2   :  { %2702 = sst [smem:[#allocation9_spill]] %s2671_s1 }
   0x3   :  { %2703 = sst [smem:[#allocation10_spill]] %s2672_s2 }
   0x4   :  { %2704 = sst [smem:[#allocation11_spill]] %s2673_s3 }
   0x5   :  { %2705 = sst [smem:[#allocation12_spill]] %s2674_s4 }
   0x6   :  { %2706 = sst [smem:[#allocation13_spill]] %s2675_s5 }
   0x7   :  { %2707 = sst [smem:[#allocation14_spill]] %s2676_s6 }
   0x8   :  { %2708 = sst [smem:[#allocation15_spill]] %s2677_s7 }
   0x9   :  { %2709 = sst [smem:[#allocation16_spill]] %s2678_s8 }
   0xa   :  { %2710 = sst [smem:[#allocation17_spill]] %s2679_s9 }
   0xb   :  { %2711 = sst [smem:[#allocation18_spill]] %s2680_s10 }
   0xc   :  { %31 = vsyncpa [#allocation4], 0 }
   0xd   :  { %32 = vsyncpa [#allocation3], 0  ;;  %s2712_s7 = sld [smem:[#allocation8_spill]] }
  0x13   :  { %s39_s28 = sshll.u32 %s2712_s7, 4  ;;  %s40_s28 = int_to_ptr.vmem [resolvable:$true] %s39_s28 }
  0x14   :  { %s2014_s8 = scalar_lea.vmem %s40_s28, 16  ;;  %p2019_p1 = scmp.lt.s32.totalorder %s40_s28, %s40_s28 }
  0x15   :  { %p2015_p0 = scmp.ne.s32.totalorder %s40_s28, %s2014_s8  ;;  %p2020_p2 = scmp.lt.s32.totalorder %s2014_s8, %s2014_s8 }
  0x17   :  { %p2021_p3 = por %p2020_p2, %p2019_p1 }
  0x19   :  { %p2022_p4 = pnand %p2021_p3, %p2015_p0 }
  0x1b   :  { %2025 = shalt.err (!%p2022_p4)
}
  0x1c   :  { %s2052_s4 = smov [#allocation2]  }
  0x1d   :  { %42 = dma.vmem_to_smem %s40_s28, 16, %s2052_s4, [#allocation4]  }
  0x1e   :  { %2048 = dma.done.wait [#allocation4], 16  }
  0x1f   :  { %2049 = vsyncadd [#allocation4], 4294967280 }
  0x20   :  { %96 = sfence }
  0x21   :  { %s2713_s9 = sld [smem:[#allocation10_spill]]  ;;  %v2053_v2 = vmov 0.0|0.0   ;;  %vm2054_vm0 = vmmov 0   ;;  %v2055_v4 = vmov 0.0   ;;  %s2714_s6 = sld [smem:[#allocation11_spill]]  ;;  %v181_v6 = vld [vmem:[%s2690_s20] sm:$0xff] }
  0x22   :  { %1779 = vmatprep.subr.bf16.mxu0 %v2053_v2  ;;  %1503 = vmatprep.mubr.msk.f32.mxu0 %vm2054_vm0, %v2055_v4  ;;  %v182_v7 = vld [vmem:[%s2690_s20 + $0x8] sm:$0xff]  ;;  %v183_v8 = vld [vmem:[%s2690_s20 + $0x10] sm:$0xff]  ;;  %vm107_vm1 = vcmask 130048   ;;  %v184_v10 = vld [vmem:[%s2690_s20 + $0x18] sm:$0xff]  ;;  %s2715_s30 = sld [smem:[#allocation12_spill]]  ;;  %s2716_s1 = sld [smem:[#allocation9_spill]] }
  0x23   :  { %1782 = vmatprep.subr.bf16.mxu1 %v2053_v2  ;;  %1538 = vmatprep.mubr.msk.f32.mxu1 %vm2054_vm0, %v2055_v4  ;;  %v1783_v9 = vpack.c.bf16 %v182_v7, %v181_v6  ;;  %v1786_v15 = vpack.c.bf16 %v184_v10, %v183_v8  ;;  %v185_v18 = vld [vmem:[%s2690_s20 + $0x20] sm:$0xff]  ;;  %v186_v19 = vld [vmem:[%s2690_s20 + $0x28] sm:$0xff]  ;;  %v187_v25 = vld [vmem:[%s2690_s20 + $0x30] sm:$0xff]  ;;  %s274_s10 = sld [smem:[#allocation2]]  ;;  %s2717_s3 = sld [smem:[#allocation13_spill]] }
  0x24   :  { %v1789_v22 = vpack.c.bf16 %v186_v19, %v185_v18  ;;  %v188_v26 = vld [vmem:[%s2690_s20 + $0x38] sm:$0xff]  ;;  %v189_v31 = vld [vmem:[%s2690_s20 + $0x40] sm:$0xff]  ;;  %v190_v32 = vld [vmem:[%s2690_s20 + $0x48] sm:$0xff]  ;;  %s2718_s28 = sld [smem:[#allocation14_spill]]  ;;  %s2719_s4 = sld [smem:[#allocation16_spill]] }
  0x25   :  { %1784 = vmatpush3.bf16.msra.mxu1 %v1783_v9  ;;  %v1792_v28 = vpack.c.bf16 %v188_v26, %v187_v25  ;;  %v1795_v34 = vpack.c.bf16 %v190_v32, %v189_v31  ;;  %v191_v37 = vld [vmem:[%s2690_s20 + $0x50] sm:$0xff]  ;;  %v192_v38 = vld [vmem:[%s2690_s20 + $0x58] sm:$0xff]  ;;  %v193_v43 = vld [vmem:[%s2690_s20 + $0x60] sm:$0xff]  ;;  %s2721_s5 = sld [smem:[#allocation15_spill]] }
  0x26   :  { %1785 = vmatprep.subr.bf16.mxu1 %v2053_v2  ;;  %v1798_v40 = vpack.c.bf16 %v192_v38, %v191_v37  ;;  %v194_v44 = vld [vmem:[%s2690_s20 + $0x68] sm:$0xff]  ;;  %v195_v47 = vld [vmem:[%s2690_s20 + $0x70] sm:$0xff]  ;;  %v196_v48 = vld [vmem:[%s2690_s20 + $0x78] sm:$0xff]  ;;  %s2720_s20 = sld [smem:[#allocation17_spill]] }
  0x27   :  { %v2198_v0 = vld [vmem:[%s2713_s9] sm:$0xff]  ;;  %v2203_v1 = vld [vmem:[%s2713_s9 + $0x8] sm:$0xff]  ;;  %v1801_v46 = vpack.c.bf16 %v194_v44, %v193_v43  ;;  %v1804_v49 = vpack.c.bf16 %v196_v48, %v195_v47  ;;  %s2056_s9 = smov [#allocation5]  }
  0x28   :  { %v1780_v3 = vpack.c.bf16 %v2203_v1, %v2198_v0  ;;  %v2213_v5 = vld [vmem:[%s2714_s6] sm:$0x3]  ;;  %v361_v12 = vld [vmem:[%s2715_s30 + $0x8] sm:$0xff]  ;;  %v362_v16 = vld [vmem:[%s2715_s30 + $0x10] sm:$0xff]  ;;  %s1330_s2 = sshll.u32 %s2056_s9, 4  ;;  %s1331_s2 = int_to_ptr.vmem [resolvable:$true] %s1330_s2 }
  0x29   :  { %v360_v11 = vld [vmem:[%s2715_s30] sm:$0xff]  ;;  %v363_v17 = vld [vmem:[%s2715_s30 + $0x18] sm:$0xff]  ;;  %v2261_v20 = vld [vmem:[%s2716_s1 + $0x8] sm:$0xff]  ;;  %1787 = vmatpush3.bf16.msra.mxu1 %v1786_v15  ;;  %s275_s6 = sadd.f32 1.0, %s274_s10  ;;  %s1349_s10 = sld [smem:[#allocation2 + $0x1]] }
  0x2a   :  { %1781 = vmatpush3.bf16.msra.mxu0 %v1780_v3  ;;  %v2239_v13 = vld [vmem:[%s2716_s1] sm:$0xff]  ;;  %v1810_v14 = vpack.c.bf16 %v361_v12, %v360_v11  ;;  %v1814_v21 = vpack.c.bf16 %v363_v17, %v362_v16  ;;  %v365_v24 = vld [vmem:[%s2715_s30 + $0x28] sm:$0xff]  ;;  %1788 = vmatprep.subr.bf16.mxu1 %v2053_v2  ;;  %v366_v29 = vld [vmem:[%s2715_s30 + $0x30] sm:$0xff]  ;;  %p2031_p6 = scmp.lt.s32.totalorder %s1331_s2, %s1331_s2 }
  0x2b   :  { %1807 = vmatprep.subr.bf16.mxu0 %v1780_v3  ;;  %v364_v23 = vld [vmem:[%s2715_s30 + $0x20] sm:$0xff]  ;;  %v367_v30 = vld [vmem:[%s2715_s30 + $0x38] sm:$0xff]  ;;  %v369_v36 = vld [vmem:[%s2715_s30 + $0x48] sm:$0xff]  ;;  %v276_v56 = vstv %s275_s6  ;;  %s2722_s6 = sld [smem:[#allocation18_spill]] }
  0x2c   :  { %v1818_v27 = vpack.c.bf16 %v365_v24, %v364_v23  ;;  %v1822_v33 = vpack.c.bf16 %v367_v30, %v366_v29  ;;  %v368_v35 = vld [vmem:[%s2715_s30 + $0x40] sm:$0xff]  ;;  %v370_v41 = vld [vmem:[%s2715_s30 + $0x50] sm:$0xff]  ;;  %v371_v42 = vld [vmem:[%s2715_s30 + $0x58] sm:$0xff]  ;;  %v277_v59 = vmul.f32 %v276_v56, %v2198_v0  ;;  %v278_v60 = vmul.f32 %v276_v56, %v2203_v1 }
  0x2d   :  { %1504 = vmatmul.mubr.msk.f32.vlgmr.msra.gmra.mrb[0].mxu0 %vm107_vm1, %v2213_v5  ;;  %1790 = vmatpush3.bf16.msra.mxu1 %v1789_v22  ;;  %v1826_v39 = vpack.c.bf16 %v369_v36, %v368_v35  ;;  %v1830_v45 = vpack.c.bf16 %v371_v42, %v370_v41  ;;  %v372_v50 = vld [vmem:[%s2715_s30 + $0x60] sm:$0xff]  ;;  %v373_v51 = vld [vmem:[%s2715_s30 + $0x68] sm:$0xff]  ;;  %v374_v53 = vld [vmem:[%s2715_s30 + $0x70] sm:$0xff] }
  0x2e   :  { %1809 = vmatpush3.bf16.msra.mxu0 %v1780_v3  ;;  %1545 = vmatprep.mubr.msk.f32.mxu0 %vm107_vm1, %v2239_v13  ;;  %v1834_v52 = vpack.c.bf16 %v373_v51, %v372_v50  ;;  %v375_v54 = vld [vmem:[%s2715_s30 + $0x78] sm:$0xff]  ;;  %v503_v6 = vld [vmem:[%s2717_s3] sm:$0xff]  ;;  %v504_v7 = vld [vmem:[%s2717_s3 + $0x8] sm:$0xff] }
  0x2f   :  { %1811 = vmatprep.subr.bf16.mxu0 %v1810_v14  ;;  %1791 = vmatprep.subr.bf16.mxu1 %v2053_v2  ;;  %v1838_v55 = vpack.c.bf16 %v375_v54, %v374_v53  ;;  %v1842_v0 = vpack.c.bf16 %v504_v7, %v503_v6  ;;  %v505_v1 = vld [vmem:[%s2717_s3 + $0x10] sm:$0xff]  ;;  %v506_v8 = vld [vmem:[%s2717_s3 + $0x18] sm:$0xff]  ;;  %v507_v10 = vld [vmem:[%s2717_s3 + $0x20] sm:$0xff] }
  0x30   :  { %v1846_v9 = vpack.c.bf16 %v506_v8, %v505_v1  ;;  %v508_v11 = vld [vmem:[%s2717_s3 + $0x28] sm:$0xff]  ;;  %v510_v15 = vld [vmem:[%s2717_s3 + $0x38] sm:$0xff]  ;;  %v511_v17 = vld [vmem:[%s2717_s3 + $0x40] sm:$0xff] }
  0x31   :  { %1546 = vmatmul.mubr.msk.f32.vlgmr.msra.gmra.mrb[2].mxu0 %vm107_vm1, %v2261_v20  ;;  %1793 = vmatpush3.bf16.msra.mxu1 %v1792_v28  ;;  %v1850_v12 = vpack.c.bf16 %v508_v11, %v507_v10  ;;  %v512_v18 = vld [vmem:[%s2717_s3 + $0x48] sm:$0xff]  ;;  %v514_v22 = vld [vmem:[%s2717_s3 + $0x58] sm:$0xff]  ;;  %v515_v24 = vld [vmem:[%s2717_s3 + $0x60] sm:$0xff] }
  0x32   :  { %1813 = vmatpush3.bf16.msra.mxu0 %v1810_v14  ;;  %1794 = vmatprep.subr.bf16.mxu1 %v2053_v2  ;;  %v509_v14 = vld [vmem:[%s2717_s3 + $0x30] sm:$0xff]  ;;  %v1858_v19 = vpack.c.bf16 %v512_v18, %v511_v17  ;;  %v516_v25 = vld [vmem:[%s2717_s3 + $0x68] sm:$0xff]  ;;  %v518_v28 = vld [vmem:[%s2717_s3 + $0x78] sm:$0xff] }
  0x33   :  { %1815 = vmatprep.subr.bf16.mxu0 %v1814_v21  ;;  %v1854_v16 = vpack.c.bf16 %v510_v15, %v509_v14  ;;  %v1866_v26 = vpack.c.bf16 %v516_v25, %v515_v24  ;;  %v1342_v30 = vld [vmem:[%s2718_s28] ss:$0 sm:$0xff]  ;;  %v716_v1 = vld [vmem:[%s2691_s21 + $0x8] sm:$0xff]  ;;  %v717_v8 = vld [vmem:[%s2691_s21 + $0x10] sm:$0xff] }
  0x34   :  { %v718_v10 = vld [vmem:[%s2691_s21 + $0x18] sm:$0xff]  ;;  %v720_v14 = vld [vmem:[%s2691_s21 + $0x28] sm:$0xff] }
  0x35   :  { %1796 = vmatpush3.bf16.msra.mxu1 %v1795_v34  ;;  %v1881_v11 = vpack.c.bf16 %v718_v10, %v717_v8  ;;  %v722_v17 = vld [vmem:[%s2691_s21 + $0x38] sm:$0xff]  ;;  %v883_v10 = vld [vmem:[%s2682_s12 + $0x8] sm:$0xff] }
  0x36   :  { %1817 = vmatpush3.bf16.msra.mxu0 %v1814_v21  ;;  %1797 = vmatprep.subr.bf16.mxu1 %v2053_v2  ;;  %v513_v21 = vld [vmem:[%s2717_s3 + $0x50] sm:$0xff]  ;;  %v726_v24 = vld [vmem:[%s2691_s21 + $0x58] sm:$0xff] }
  0x37   :  { %1819 = vmatprep.subr.bf16.mxu0 %v1818_v27  ;;  %v1862_v23 = vpack.c.bf16 %v514_v22, %v513_v21  ;;  %v724_v21 = vld [vmem:[%s2691_s21 + $0x48] sm:$0xff] }
  0x39   :  { %1799 = vmatpush3.bf16.msra.mxu1 %v1798_v40 }
  0x3a   :  { %1821 = vmatpush3.bf16.msra.mxu0 %v1818_v27  ;;  %1800 = vmatprep.subr.bf16.mxu1 %v2053_v2  ;;  %v517_v27 = vld [vmem:[%s2717_s3 + $0x70] sm:$0xff] }
  0x3b   :  { %1823 = vmatprep.subr.bf16.mxu0 %v1822_v33  ;;  %v1870_v29 = vpack.c.bf16 %v518_v28, %v517_v27  ;;  %v728_v27 = vld [vmem:[%s2691_s21 + $0x68] sm:$0xff] }
  0x3d   :  { %1802 = vmatpush3.bf16.msra.mxu1 %v1801_v46 }
  0x3e   :  { %1825 = vmatpush3.bf16.msra.mxu0 %v1822_v33  ;;  %1803 = vmatprep.subr.bf16.mxu1 %v2053_v2 }
  0x3f   :  { %1827 = vmatprep.subr.bf16.mxu0 %v1826_v39 }
  0x41   :  { %1805 = vmatpush3.bf16.msra.mxu1 %v1804_v49 }
  0x42   :  { %1829 = vmatpush3.bf16.msra.mxu0 %v1826_v39  ;;  %1843 = vmatprep.subr.bf16.mxu1 %v1842_v0 }
  0x43   :  { %1831 = vmatprep.subr.bf16.mxu0 %v1830_v45 }
  0x46   :  { %1833 = vmatpush3.bf16.msra.mxu0 %v1830_v45 }
  0x47   :  { %1835 = vmatprep.subr.bf16.mxu0 %v1834_v52 }
  0x4a   :  { %1837 = vmatpush3.bf16.msra.mxu0 %v1834_v52 }
  0x4b   :  { %1839 = vmatprep.subr.bf16.mxu0 %v1838_v55 }
  0x4e   :  { %1841 = vmatpush3.bf16.msra.mxu0 %v1838_v55 }
  0x4f   :  { %1874 = vmatprep.subr.bf16.mxu0 %v2053_v2 }
 0x100   :  { %v177_v57 = vpop.f32.mrb[0].mxu0 }
 0x101   :  { %v1505_v58 = vpop.f32.mrb[1].mxu0  ;;  %1539 = vmatmul.mubr.f32.vlgmr.msra.gmra.mrb[0].mxu1 %v177_v57  ;;  %v1343_v57 = vld [vmem:[%s2719_s4] ss:$0 sm:$0xff] }
 0x102   :  { %1845 = vmatpush3.bf16.msra.mxu1 %v1842_v0  ;;  %v715_v0 = vld [vmem:[%s2691_s21] sm:$0xff] }
 0x103   :  { %1847 = vmatprep.subr.bf16.mxu1 %v1846_v9 }
 0x104   :  { %v1547_v61 = vpop.f32.mrb[2].mxu0 }
 0x105   :  { %v351_v62 = vpop.f32.mrb[3].mxu0  ;;  %v357_v3 = vadd.f32 %v1547_v61, %v278_v60  ;;  %v1344_v60 = vld [vmem:[%s2720_s20] ss:$0 sm:$0xff] }
 0x106   :  { %v352_v63 = vadd.f32 %v351_v62, %v277_v59  ;;  %1849 = vmatpush3.bf16.msra.mxu1 %v1846_v9  ;;  %v1878_v9 = vpack.c.bf16 %v716_v1, %v715_v0 }
 0x107   :  { %1851 = vmatprep.subr.bf16.mxu1 %v1850_v12 }
 0x108   :  { %1580 = vmatprep.mubr.f32.mxu0 %v352_v63 }
 0x109   :  { %1581 = vmatmul.mubr.f32.vlgmr.msra.gmra.mrb[4].mxu0 %v357_v3 }
 0x10a   :  { %1622 = vmatprep.mubr.msk.f32.mxu0 %vm2054_vm0, %v2055_v4  ;;  %1853 = vmatpush3.bf16.msra.mxu1 %v1850_v12  ;;  %v719_v12 = vld [vmem:[%s2691_s21 + $0x20] sm:$0xff] }
 0x10b   :  { %1855 = vmatprep.subr.bf16.mxu1 %v1854_v16  ;;  %v1884_v15 = vpack.c.bf16 %v720_v14, %v719_v12  ;;  %v884_v12 = vld [vmem:[%s2682_s12 + $0x10] sm:$0xff]  ;;  %v885_v14 = vld [vmem:[%s2682_s12 + $0x18] sm:$0xff] }
 0x10e   :  { %1857 = vmatpush3.bf16.msra.mxu1 %v1854_v16  ;;  %v721_v16 = vld [vmem:[%s2691_s21 + $0x30] sm:$0xff] }
 0x10f   :  { %1859 = vmatprep.subr.bf16.mxu1 %v1858_v19  ;;  %v1887_v18 = vpack.c.bf16 %v722_v17, %v721_v16  ;;  %v886_v16 = vld [vmem:[%s2682_s12 + $0x20] sm:$0xff]  ;;  %v887_v17 = vld [vmem:[%s2682_s12 + $0x28] sm:$0xff] }
 0x112   :  { %1861 = vmatpush3.bf16.msra.mxu1 %v1858_v19  ;;  %v723_v19 = vld [vmem:[%s2691_s21 + $0x40] sm:$0xff] }
 0x113   :  { %1863 = vmatprep.subr.bf16.mxu1 %v1862_v23  ;;  %v1890_v22 = vpack.c.bf16 %v724_v21, %v723_v19  ;;  %v889_v19 = vld [vmem:[%s2682_s12 + $0x38] sm:$0xff] }
 0x116   :  { %1865 = vmatpush3.bf16.msra.mxu1 %v1862_v23  ;;  %v725_v23 = vld [vmem:[%s2691_s21 + $0x50] sm:$0xff] }
 0x117   :  { %1867 = vmatprep.subr.bf16.mxu1 %v1866_v26  ;;  %v1893_v25 = vpack.c.bf16 %v726_v24, %v725_v23  ;;  %v892_v24 = vld [vmem:[%s2682_s12 + $0x50] sm:$0xff] }
 0x11a   :  { %1869 = vmatpush3.bf16.msra.mxu1 %v1866_v26  ;;  %v727_v26 = vld [vmem:[%s2691_s21 + $0x60] sm:$0xff] }
 0x11b   :  { %1871 = vmatprep.subr.bf16.mxu1 %v1870_v29  ;;  %v1896_v28 = vpack.c.bf16 %v728_v27, %v727_v26  ;;  %v894_v27 = vld [vmem:[%s2682_s12 + $0x60] sm:$0xff] }
 0x11e   :  { %1873 = vmatpush3.bf16.msra.mxu1 %v1870_v29  ;;  %v729_v29 = vld [vmem:[%s2691_s21 + $0x70] sm:$0xff] }
 0x11f   :  { %1877 = vmatprep.subr.bf16.mxu1 %v2053_v2 }
 0x1dc   :  { %v1582_v31 = vpop.f32.mrb[4].mxu0 }
 0x1dd   :  { %v455_v32 = vadd.f32 %v1582_v31, %v1342_v30  ;;  %v449_v33 = vpop.f32.mrb[5].mxu0 }
 0x1de   :  { %v450_v34 = vadd.f32 %v1342_v30, %v449_v33  ;;  %v730_v30 = vld [vmem:[%s2691_s21 + $0x78] sm:$0xff] }
 0x1df   :  { %v1899_v31 = vpack.c.bf16 %v730_v30, %v729_v29  ;;  %v896_v30 = vld [vmem:[%s2682_s12 + $0x70] sm:$0xff] }
 0x1e0   :  { %v458_v35 = vadd.f32 %v455_v32, %v450_v34 }
 0x1e2   :  { %v459_v36 = vrot.slane %v458_v35, 4 }
 0x1e4   :  { %v460_v37 = vadd.f32 %v459_v36, %v458_v35 }
 0x1e6   :  { %v461_v38 = vrot.slane %v460_v37, 2 }
 0x1e8   :  { %v462_v39 = vadd.f32 %v461_v38, %v460_v37 }
 0x1ea   :  { %v463_v40 = vrot.slane %v462_v39, 1 }
 0x1ec   :  { %v464_v41 = vadd.f32 %v463_v40, %v462_v39 }
 0x1ee   :  { %v466_v42 = vmul.f32 0.0625, %v464_v41 }
 0x1f0   :  { %v467_v43 = vsub.f32 %v450_v34, %v466_v42  ;;  %v468_v44 = vsub.f32 %v455_v32, %v466_v42  ;;  %v1345_v32 = vld [vmem:[%s2721_s5] ss:$0 sm:$0xff] }
 0x1f2   :  { %v469_v45 = vmul.f32 %v467_v43, %v467_v43  ;;  %v470_v46 = vmul.f32 %v468_v44, %v468_v44 }
 0x1f4   :  { %v471_v47 = vadd.f32 %v470_v46, %v469_v45 }
 0x1f6   :  { %v472_v48 = vrot.slane %v471_v47, 4 }
 0x1f8   :  { %v473_v49 = vadd.f32 %v472_v48, %v471_v47 }
 0x1fa   :  { %v474_v50 = vrot.slane %v473_v49, 2 }
 0x1fc   :  { %v475_v51 = vadd.f32 %v474_v50, %v473_v49 }
 0x1fe   :  { %v476_v52 = vrot.slane %v475_v51, 1 }
 0x200   :  { %v477_v53 = vadd.f32 %v476_v52, %v475_v51 }
 0x202   :  { %v478_v54 = vmul.f32 0.0625, %v477_v53 }
 0x204   :  { %v479_v55 = vadd.f32 1e-05, %v478_v54 }
 0x206   :  { %2006 = vrsqrt.f32 %v479_v55 }
 0x210   :  { %v2007_v56 = vpop.eup %2006 }
 0x211   :  { %v481_v58 = vmul.f32 %v2007_v56, %v467_v43  ;;  %v482_v59 = vmul.f32 %v2007_v56, %v468_v44 }
 0x213   :  { %v490_v61 = vmul.f32 %v1343_v57, %v481_v58  ;;  %v491_v62 = vmul.f32 %v1343_v57, %v482_v59  ;;  %v1346_v59 = vld [vmem:[%s2722_s6] ss:$0 sm:$0xff]  ;;  %s803_s6 = sadd.f32 1.0, %s1349_s10 }
 0x215   :  { %v499_v63 = vadd.f32 %v1344_v60, %v490_v61  ;;  %v500_v3 = vadd.f32 %v1344_v60, %v491_v62  ;;  %v1347_v62 = vld [vmem:[%s2681_s11] ss:$0 sm:$0xff] }
 0x217   :  { %v501_v6 = vmax.f32 %v499_v63, 0.0  ;;  %v502_v7 = vmax.f32 %v500_v3, 0.0 }
 0x219   :  { %1615 = vmatprep.mubr.f32.mxu1 %v501_v6 }
 0x21a   :  { %1616 = vmatmul.mubr.f32.vlgmr.msra.gmra.mrb[2].mxu1 %v502_v7 }
 0x21b   :  { %1657 = vmatprep.mubr.msk.f32.mxu1 %vm2054_vm0, %v2055_v4  ;;  %1879 = vmatpush3.bf16.msra.mxu1 %v1878_v9  ;;  %v882_v9 = vld [vmem:[%s2682_s12] sm:$0xff] }
 0x21c   :  { %1880 = vmatprep.subr.bf16.mxu1 %v2053_v2 }
 0x21f   :  { %1882 = vmatpush3.bf16.msra.mxu1 %v1881_v11  ;;  %v1905_v11 = vpack.c.bf16 %v883_v10, %v882_v9 }
 0x220   :  { %1883 = vmatprep.subr.bf16.mxu1 %v2053_v2 }
 0x223   :  { %1885 = vmatpush3.bf16.msra.mxu1 %v1884_v15  ;;  %v1909_v15 = vpack.c.bf16 %v885_v14, %v884_v12 }
 0x224   :  { %1886 = vmatprep.subr.bf16.mxu1 %v2053_v2 }
 0x227   :  { %1888 = vmatpush3.bf16.msra.mxu1 %v1887_v18  ;;  %v1913_v18 = vpack.c.bf16 %v887_v17, %v886_v16 }
 0x228   :  { %1889 = vmatprep.subr.bf16.mxu1 %v2053_v2 }
 0x22b   :  { %1891 = vmatpush3.bf16.msra.mxu1 %v1890_v22  ;;  %v890_v22 = vld [vmem:[%s2682_s12 + $0x40] sm:$0xff] }
 0x22c   :  { %1892 = vmatprep.subr.bf16.mxu1 %v2053_v2 }
 0x22f   :  { %1894 = vmatpush3.bf16.msra.mxu1 %v1893_v25  ;;  %v893_v25 = vld [vmem:[%s2682_s12 + $0x58] sm:$0xff] }
 0x230   :  { %1895 = vmatprep.subr.bf16.mxu1 %v2053_v2  ;;  %v1925_v26 = vpack.c.bf16 %v893_v25, %v892_v24 }
 0x233   :  { %1897 = vmatpush3.bf16.msra.mxu1 %v1896_v28  ;;  %v895_v28 = vld [vmem:[%s2682_s12 + $0x68] sm:$0xff] }
 0x234   :  { %1898 = vmatprep.subr.bf16.mxu1 %v2053_v2  ;;  %v1929_v29 = vpack.c.bf16 %v895_v28, %v894_v27 }
 0x237   :  { %1900 = vmatpush3.bf16.msra.mxu1 %v1899_v31  ;;  %v897_v31 = vld [vmem:[%s2682_s12 + $0x78] sm:$0xff] }
 0x238   :  { %1972 = vmatprep.subr.bf16.mxu1 %v2053_v2 }
 0x2ed   :  { %v1617_v33 = vpop.f32.mrb[2].mxu1 }
 0x2ee   :  { %v598_v34 = vadd.f32 %v1617_v33, %v1345_v32  ;;  %v592_v35 = vpop.f32.mrb[3].mxu1 }
 0x2ef   :  { %v593_v36 = vadd.f32 %v1345_v32, %v592_v35  ;;  %v1933_v32 = vpack.c.bf16 %v897_v31, %v896_v30 }
 0x2f1   :  { %v601_v37 = vadd.f32 %v598_v34, %v593_v36 }
 0x2f3   :  { %v602_v38 = vrot.slane %v601_v37, 4 }
 0x2f5   :  { %v603_v39 = vadd.f32 %v602_v38, %v601_v37 }
 0x2f7   :  { %v604_v40 = vrot.slane %v603_v39, 2 }
 0x2f9   :  { %v605_v41 = vadd.f32 %v604_v40, %v603_v39 }
 0x2fb   :  { %v606_v42 = vrot.slane %v605_v41, 1 }
 0x2fd   :  { %v607_v43 = vadd.f32 %v606_v42, %v605_v41  ;;  %v1024_v42 = vld [vmem:[%s2683_s13] sm:$0xff] }
 0x2ff   :  { %v608_v44 = vmul.f32 0.0625, %v607_v43  ;;  %v1025_v43 = vld [vmem:[%s2683_s13 + $0x8] sm:$0xff] }
 0x301   :  { %v609_v45 = vsub.f32 %v593_v36, %v608_v44  ;;  %v610_v46 = vsub.f32 %v598_v34, %v608_v44  ;;  %v804_v34 = vstv %s803_s6  ;;  %v1937_v44 = vpack.c.bf16 %v1025_v43, %v1024_v42  ;;  %v1236_v42 = vld [vmem:[%s2692_s22] sm:$0xff]  ;;  %v1237_v43 = vld [vmem:[%s2692_s22 + $0x8] sm:$0xff] }
 0x303   :  { %v611_v47 = vmul.f32 %v609_v45, %v609_v45  ;;  %v612_v48 = vmul.f32 %v610_v46, %v610_v46 }
 0x305   :  { %v613_v49 = vadd.f32 %v612_v48, %v611_v47  ;;  %v1028_v48 = vld [vmem:[%s2683_s13 + $0x20] sm:$0xff] }
 0x307   :  { %v614_v50 = vrot.slane %v613_v49, 4 }
 0x309   :  { %v615_v51 = vadd.f32 %v614_v50, %v613_v49  ;;  %v1029_v49 = vld [vmem:[%s2683_s13 + $0x28] sm:$0xff] }
 0x30a   :  { %v1945_v50 = vpack.c.bf16 %v1029_v49, %v1028_v48  ;;  %v1241_v48 = vld [vmem:[%s2692_s22 + $0x28] sm:$0xff] }
 0x30b   :  { %v616_v52 = vrot.slane %v615_v51, 2 }
 0x30d   :  { %v617_v53 = vadd.f32 %v616_v52, %v615_v51  ;;  %v1030_v51 = vld [vmem:[%s2683_s13 + $0x30] sm:$0xff]  ;;  %v1031_v52 = vld [vmem:[%s2683_s13 + $0x38] sm:$0xff] }
 0x30f   :  { %v618_v54 = vrot.slane %v617_v53, 1 }
 0x311   :  { %v619_v55 = vadd.f32 %v618_v54, %v617_v53  ;;  %v1949_v53 = vpack.c.bf16 %v1031_v52, %v1030_v51  ;;  %v1032_v54 = vld [vmem:[%s2683_s13 + $0x40] sm:$0xff]  ;;  %v1243_v51 = vld [vmem:[%s2692_s22 + $0x38] sm:$0xff] }
 0x313   :  { %v620_v56 = vmul.f32 0.0625, %v619_v55  ;;  %v1033_v55 = vld [vmem:[%s2683_s13 + $0x48] sm:$0xff] }
 0x315   :  { %v621_v57 = vadd.f32 1e-05, %v620_v56  ;;  %v1953_v56 = vpack.c.bf16 %v1033_v55, %v1032_v54  ;;  %v1245_v54 = vld [vmem:[%s2692_s22 + $0x48] sm:$0xff] }
 0x317   :  { %2008 = vrsqrt.f32 %v621_v57  ;;  %v1034_v57 = vld [vmem:[%s2683_s13 + $0x50] sm:$0xff] }
 0x321   :  { %v2009_v58 = vpop.eup %2008 }
 0x322   :  { %v623_v60 = vmul.f32 %v2009_v58, %v609_v45  ;;  %v624_v61 = vmul.f32 %v2009_v58, %v610_v46  ;;  %v1026_v45 = vld [vmem:[%s2683_s13 + $0x10] sm:$0xff]  ;;  %v1027_v46 = vld [vmem:[%s2683_s13 + $0x18] sm:$0xff] }
 0x323   :  { %v1941_v47 = vpack.c.bf16 %v1027_v46, %v1026_v45  ;;  %v1035_v58 = vld [vmem:[%s2683_s13 + $0x58] sm:$0xff]  ;;  %v1973_v45 = vpack.c.bf16 %v1237_v43, %v1236_v42  ;;  %v268_v43 = vlaneseq }
 0x324   :  { %v632_v63 = vmul.f32 %v1346_v59, %v623_v60  ;;  %v633_v3 = vmul.f32 %v1346_v59, %v624_v61  ;;  %v1957_v59 = vpack.c.bf16 %v1035_v58, %v1034_v57  ;;  %v1036_v60 = vld [vmem:[%s2683_s13 + $0x60] sm:$0xff]  ;;  %v1037_v61 = vld [vmem:[%s2683_s13 + $0x68] sm:$0xff]  ;;  %v1239_v46 = vld [vmem:[%s2692_s22 + $0x18] sm:$0xff] }
 0x325   :  { %v1247_v57 = vld [vmem:[%s2692_s22 + $0x58] sm:$0xff] }
 0x326   :  { %v641_v6 = vadd.f32 %v1347_v62, %v632_v63  ;;  %v642_v7 = vadd.f32 %v1347_v62, %v633_v3  ;;  %v1961_v62 = vpack.c.bf16 %v1037_v61, %v1036_v60  ;;  %v1038_v63 = vld [vmem:[%s2683_s13 + $0x70] sm:$0xff]  ;;  %v1039_v3 = vld [vmem:[%s2683_s13 + $0x78] sm:$0xff]  ;;  %v1249_v60 = vld [vmem:[%s2692_s22 + $0x68] sm:$0xff] }
 0x328   :  { %v643_v0 = vmax.f32 %v641_v6, 0.0  ;;  %v644_v1 = vmax.f32 %v642_v7, 0.0  ;;  %v1965_v6 = vpack.c.bf16 %v1039_v3, %v1038_v63  ;;  %v1352_v7 = vld [vmem:[%s2684_s14] ss:$0 sm:$0xff]  ;;  %v1251_v63 = vld [vmem:[%s2692_s22 + $0x78] sm:$0xff] }
 0x32a   :  { %v1875_v8 = vpack.c.bf16 %v644_v1, %v643_v0  ;;  %v806_v36 = vmul.f32 %v804_v34, %v644_v1  ;;  %v805_v38 = vmul.f32 %v804_v34, %v643_v0 }
 0x32c   :  { %1876 = vmatpush3.bf16.msra.mxu0 %v1875_v8 }
 0x32d   :  { %1902 = vmatprep.subr.bf16.mxu0 %v1875_v8 }
 0x32f   :  { %1623 = vmatmul.mubr.msk.f32.vlgmr.msra.gmra.mrb[6].mxu0 %vm107_vm1, %v2213_v5 }
 0x330   :  { %1904 = vmatpush3.bf16.msra.mxu0 %v1875_v8  ;;  %1664 = vmatprep.mubr.msk.f32.mxu0 %vm107_vm1, %v2239_v13  ;;  %v888_v13 = vld [vmem:[%s2682_s12 + $0x30] sm:$0xff] }
 0x331   :  { %1906 = vmatprep.subr.bf16.mxu0 %v1905_v11  ;;  %v1917_v21 = vpack.c.bf16 %v889_v19, %v888_v13 }
 0x333   :  { %1665 = vmatmul.mubr.msk.f32.vlgmr.msra.gmra.mrb[8].mxu0 %vm107_vm1, %v2261_v20  ;;  %v891_v20 = vld [vmem:[%s2682_s12 + $0x48] sm:$0xff] }
 0x334   :  { %1908 = vmatpush3.bf16.msra.mxu0 %v1905_v11  ;;  %v1921_v23 = vpack.c.bf16 %v891_v20, %v890_v22 }
 0x335   :  { %1910 = vmatprep.subr.bf16.mxu0 %v1909_v15 }
 0x338   :  { %1912 = vmatpush3.bf16.msra.mxu0 %v1909_v15 }
 0x339   :  { %1914 = vmatprep.subr.bf16.mxu0 %v1913_v18 }
 0x33c   :  { %1916 = vmatpush3.bf16.msra.mxu0 %v1913_v18 }
 0x33d   :  { %1918 = vmatprep.subr.bf16.mxu0 %v1917_v21 }
 0x340   :  { %1920 = vmatpush3.bf16.msra.mxu0 %v1917_v21 }
 0x341   :  { %1922 = vmatprep.subr.bf16.mxu0 %v1921_v23 }
 0x344   :  { %1924 = vmatpush3.bf16.msra.mxu0 %v1921_v23 }
 0x345   :  { %1926 = vmatprep.subr.bf16.mxu0 %v1925_v26 }
 0x348   :  { %1928 = vmatpush3.bf16.msra.mxu0 %v1925_v26 }
 0x349   :  { %1930 = vmatprep.subr.bf16.mxu0 %v1929_v29 }
 0x34c   :  { %1932 = vmatpush3.bf16.msra.mxu0 %v1929_v29 }
 0x34d   :  { %1934 = vmatprep.subr.bf16.mxu0 %v1933_v32 }
 0x350   :  { %1936 = vmatpush3.bf16.msra.mxu0 %v1933_v32  ;;  %v1353_v32 = vld [vmem:[%s2686_s16] ss:$0 sm:$0xff] }
 0x351   :  { %1938 = vmatprep.subr.bf16.mxu0 %v1937_v44 }
 0x402   :  { %v711_v33 = vpop.f32.mrb[6].mxu0 }
 0x403   :  { %v1624_v35 = vpop.f32.mrb[7].mxu0  ;;  %1658 = vmatmul.mubr.f32.vlgmr.msra.gmra.mrb[0].mxu1 %v711_v33 }
 0x404   :  { %1776 = vmatprep.mubr.msk.f32.mxu1 %vm2054_vm0, %v2055_v4  ;;  %v1354_v35 = vld [vmem:[%s2687_s17] ss:$0 sm:$0xff]  ;;  %1974 = vmatpush3.bf16.msra.mxu1 %v1973_v45 }
 0x405   :  { %1975 = vmatprep.subr.bf16.mxu1 %v2053_v2  ;;  %v103_v45 = vld [vmem:[%s2694_s24] sm:$0x1] }
 0x406   :  { %v1666_v37 = vpop.f32.mrb[8].mxu0 }
 0x407   :  { %v879_v39 = vadd.f32 %v1666_v37, %v806_v36  ;;  %v873_v40 = vpop.f32.mrb[9].mxu0 }
 0x408   :  { %v874_v41 = vadd.f32 %v873_v40, %v805_v38 }
 0x40a   :  { %1699 = vmatprep.mubr.f32.mxu0 %v874_v41 }
 0x40b   :  { %1700 = vmatmul.mubr.f32.vlgmr.msra.gmra.mrb[10].mxu0 %v879_v39 }
 0x40c   :  { %1940 = vmatpush3.bf16.msra.mxu0 %v1937_v44  ;;  %v1238_v44 = vld [vmem:[%s2692_s22 + $0x10] sm:$0xff] }
 0x40d   :  { %1942 = vmatprep.subr.bf16.mxu0 %v1941_v47 }
 0x410   :  { %1944 = vmatpush3.bf16.msra.mxu0 %v1941_v47  ;;  %v1976_v47 = vpack.c.bf16 %v1239_v46, %v1238_v44  ;;  %v102_v44 = vld [vmem:[%s2693_s23] sm:$0x1]  ;;  %s2026_s23 = scalar_lea.vmem %s1331_s2, 32 }
 0x411   :  { %1946 = vmatprep.subr.bf16.mxu0 %v1945_v50  ;;  %v104_v46 = vadd.f32 %v103_v45, %v102_v44  ;;  %p2027_p5 = scmp.ne.s32.totalorder %s1331_s2, %s2026_s23  ;;  %p2032_p7 = scmp.lt.s32.totalorder %s2026_s23, %s2026_s23 }
 0x412   :  { %1977 = vmatpush3.bf16.msra.mxu1 %v1976_v47  ;;  %v269_v47 = vshrl.u32 %v268_v43, 7 }
 0x413   :  { %1978 = vmatprep.subr.bf16.mxu1 %v2053_v2  ;;  %p2033_p8 = por %p2032_p7, %p2031_p6 }
 0x414   :  { %1948 = vmatpush3.bf16.msra.mxu0 %v1945_v50  ;;  %v1242_v50 = vld [vmem:[%s2692_s22 + $0x30] sm:$0xff] }
 0x415   :  { %1950 = vmatprep.subr.bf16.mxu0 %v1949_v53  ;;  %v1982_v52 = vpack.c.bf16 %v1243_v51, %v1242_v50  ;;  %p2034_p9 = pnand %p2033_p8, %p2027_p5 }
 0x418   :  { %1952 = vmatpush3.bf16.msra.mxu0 %v1949_v53  ;;  %v1244_v53 = vld [vmem:[%s2692_s22 + $0x40] sm:$0xff] }
 0x419   :  { %1954 = vmatprep.subr.bf16.mxu0 %v1953_v56  ;;  %v1985_v55 = vpack.c.bf16 %v1245_v54, %v1244_v53 }
 0x41c   :  { %1956 = vmatpush3.bf16.msra.mxu0 %v1953_v56  ;;  %v1246_v56 = vld [vmem:[%s2692_s22 + $0x50] sm:$0xff] }
 0x41d   :  { %1958 = vmatprep.subr.bf16.mxu0 %v1957_v59  ;;  %v1988_v58 = vpack.c.bf16 %v1247_v57, %v1246_v56 }
 0x420   :  { %1960 = vmatpush3.bf16.msra.mxu0 %v1957_v59  ;;  %v1248_v59 = vld [vmem:[%s2692_s22 + $0x60] sm:$0xff] }
 0x421   :  { %1962 = vmatprep.subr.bf16.mxu0 %v1961_v62  ;;  %v1991_v61 = vpack.c.bf16 %v1249_v60, %v1248_v59 }
 0x424   :  { %1964 = vmatpush3.bf16.msra.mxu0 %v1961_v62  ;;  %v1250_v62 = vld [vmem:[%s2692_s22 + $0x70] sm:$0xff] }
 0x425   :  { %1966 = vmatprep.subr.bf16.mxu0 %v1965_v6  ;;  %v1994_v3 = vpack.c.bf16 %v1251_v63, %v1250_v62 }
 0x428   :  { %1968 = vmatpush3.bf16.msra.mxu0 %v1965_v6  ;;  %v1355_v6 = vld [vmem:[%s2685_s15] ss:$0 sm:$0xff] }
 0x429   :  { %1969 = vmatprep.subr.bf16.mxu0 %v2053_v2 }
 0x4de   :  { %v1701_v0 = vpop.f32.mrb[10].mxu0 }
 0x4df   :  { %v977_v1 = vadd.f32 %v1701_v0, %v1352_v7  ;;  %v971_v8 = vpop.f32.mrb[11].mxu0 }
 0x4e0   :  { %v972_v9 = vadd.f32 %v1352_v7, %v971_v8 }
 0x4e2   :  { %v980_v10 = vadd.f32 %v977_v1, %v972_v9 }
 0x4e4   :  { %v981_v11 = vrot.slane %v980_v10, 4 }
 0x4e6   :  { %v982_v12 = vadd.f32 %v981_v11, %v980_v10 }
 0x4e8   :  { %v983_v14 = vrot.slane %v982_v12, 2 }
 0x4ea   :  { %v984_v15 = vadd.f32 %v983_v14, %v982_v12 }
 0x4ec   :  { %v985_v16 = vrot.slane %v984_v15, 1 }
 0x4ee   :  { %v986_v17 = vadd.f32 %v985_v16, %v984_v15 }
 0x4f0   :  { %v987_v18 = vmul.f32 0.0625, %v986_v17 }
 0x4f2   :  { %v988_v13 = vsub.f32 %v972_v9, %v987_v18  ;;  %v989_v19 = vsub.f32 %v977_v1, %v987_v18 }
 0x4f4   :  { %v990_v21 = vmul.f32 %v988_v13, %v988_v13  ;;  %v991_v22 = vmul.f32 %v989_v19, %v989_v19 }
 0x4f6   :  { %v992_v20 = vadd.f32 %v991_v22, %v990_v21 }
 0x4f8   :  { %v993_v23 = vrot.slane %v992_v20, 4 }
 0x4fa   :  { %v994_v24 = vadd.f32 %v993_v23, %v992_v20 }
 0x4fc   :  { %v995_v25 = vrot.slane %v994_v24, 2 }
 0x4fe   :  { %v996_v26 = vadd.f32 %v995_v25, %v994_v24 }
 0x500   :  { %v997_v27 = vrot.slane %v996_v26, 1 }
 0x502   :  { %v998_v28 = vadd.f32 %v997_v27, %v996_v26 }
 0x504   :  { %v999_v29 = vmul.f32 0.0625, %v998_v28 }
 0x506   :  { %v1000_v30 = vadd.f32 1e-05, %v999_v29 }
 0x508   :  { %2010 = vrsqrt.f32 %v1000_v30  ;;  %v1356_v30 = vld [vmem:[%s2688_s18] ss:$0 sm:$0xff] }
 0x512   :  { %v2011_v31 = vpop.eup %2010 }
 0x513   :  { %v1002_v33 = vmul.f32 %v2011_v31, %v988_v13  ;;  %v1003_v34 = vmul.f32 %v2011_v31, %v989_v19 }
 0x515   :  { %v1011_v36 = vmul.f32 %v1353_v32, %v1002_v33  ;;  %v1012_v37 = vmul.f32 %v1353_v32, %v1003_v34  ;;  %v1357_v33 = vld [vmem:[%s2689_s19] ss:$0 sm:$0xff] }
 0x517   :  { %v1020_v38 = vadd.f32 %v1354_v35, %v1011_v36  ;;  %v1021_v39 = vadd.f32 %v1354_v35, %v1012_v37 }
 0x519   :  { %v1022_v40 = vmax.f32 %v1020_v38, 0.0  ;;  %v1023_v41 = vmax.f32 %v1021_v39, 0.0 }
 0x51b   :  { %1734 = vmatprep.mubr.f32.mxu0 %v1022_v40 }
 0x51c   :  { %1735 = vmatmul.mubr.f32.vlgmr.msra.gmra.mrb[12].mxu0 %v1023_v41 }
 0x51d   :  { %1741 = vmatprep.mubr.msk.f32.mxu0 %vm2054_vm0, %v2055_v4  ;;  %v1240_v4 = vld [vmem:[%s2692_s22 + $0x20] sm:$0xff] }
 0x51e   :  { %v1979_v49 = vpack.c.bf16 %v1241_v48, %v1240_v4  ;;  %v105_v4 = vld [vmem:[%s2695_s25] sm:$0x1] }
 0x51f   :  { %v106_v48 = vadd.f32 %v105_v4, %v104_v46 }
 0x520   :  { %1980 = vmatpush3.bf16.msra.mxu1 %v1979_v49 }
 0x521   :  { %1981 = vmatprep.subr.bf16.mxu1 %v2053_v2 }
 0x524   :  { %1983 = vmatpush3.bf16.msra.mxu1 %v1982_v52 }
 0x525   :  { %1984 = vmatprep.subr.bf16.mxu1 %v2053_v2 }
 0x528   :  { %1986 = vmatpush3.bf16.msra.mxu1 %v1985_v55 }
 0x529   :  { %1987 = vmatprep.subr.bf16.mxu1 %v2053_v2 }
 0x52c   :  { %1989 = vmatpush3.bf16.msra.mxu1 %v1988_v58 }
 0x52d   :  { %1990 = vmatprep.subr.bf16.mxu1 %v2053_v2 }
 0x530   :  { %1992 = vmatpush3.bf16.msra.mxu1 %v1991_v61 }
 0x531   :  { %1993 = vmatprep.subr.bf16.mxu1 %v2053_v2 }
 0x534   :  { %1995 = vmatpush3.bf16.msra.mxu1 %v1994_v3 }
 0x5ef   :  { %v1736_v7 = vpop.f32.mrb[12].mxu0 }
 0x5f0   :  { %v1119_v0 = vadd.f32 %v1736_v7, %v1355_v6  ;;  %v1113_v1 = vpop.f32.mrb[13].mxu0 }
 0x5f1   :  { %v1114_v8 = vadd.f32 %v1355_v6, %v1113_v1 }
 0x5f3   :  { %v1122_v9 = vadd.f32 %v1119_v0, %v1114_v8 }
 0x5f5   :  { %v1123_v10 = vrot.slane %v1122_v9, 4 }
 0x5f7   :  { %v1124_v11 = vadd.f32 %v1123_v10, %v1122_v9 }
 0x5f9   :  { %v1125_v12 = vrot.slane %v1124_v11, 2 }
 0x5fb   :  { %v1126_v14 = vadd.f32 %v1125_v12, %v1124_v11 }
 0x5fd   :  { %v1127_v15 = vrot.slane %v1126_v14, 1 }
 0x5ff   :  { %v1128_v16 = vadd.f32 %v1127_v15, %v1126_v14 }
 0x601   :  { %v1129_v17 = vmul.f32 0.0625, %v1128_v16 }
 0x603   :  { %v1130_v18 = vsub.f32 %v1114_v8, %v1129_v17  ;;  %v1131_v13 = vsub.f32 %v1119_v0, %v1129_v17 }
 0x605   :  { %v1132_v2 = vmul.f32 %v1130_v18, %v1130_v18  ;;  %v1133_v19 = vmul.f32 %v1131_v13, %v1131_v13 }
 0x607   :  { %v1134_v21 = vadd.f32 %v1133_v19, %v1132_v2 }
 0x609   :  { %v1135_v22 = vrot.slane %v1134_v21, 4 }
 0x60b   :  { %v1136_v20 = vadd.f32 %v1135_v22, %v1134_v21 }
 0x60d   :  { %v1137_v23 = vrot.slane %v1136_v20, 2 }
 0x60f   :  { %v1138_v24 = vadd.f32 %v1137_v23, %v1136_v20 }
 0x611   :  { %v1139_v25 = vrot.slane %v1138_v24, 1 }
 0x613   :  { %v1140_v26 = vadd.f32 %v1139_v25, %v1138_v24 }
 0x615   :  { %v1141_v27 = vmul.f32 0.0625, %v1140_v26 }
 0x617   :  { %v1142_v28 = vadd.f32 1e-05, %v1141_v27 }
 0x619   :  { %2012 = vrsqrt.f32 %v1142_v28 }
 0x623   :  { %v2013_v29 = vpop.eup %2012 }
 0x624   :  { %v1144_v31 = vmul.f32 %v2013_v29, %v1130_v18  ;;  %v1145_v32 = vmul.f32 %v2013_v29, %v1131_v13 }
 0x626   :  { %v1153_v34 = vmul.f32 %v1356_v30, %v1144_v31  ;;  %v1154_v35 = vmul.f32 %v1356_v30, %v1145_v32 }
 0x628   :  { %v1162_v36 = vadd.f32 %v1357_v33, %v1153_v34  ;;  %v1163_v37 = vadd.f32 %v1357_v33, %v1154_v35 }
 0x62a   :  { %v1164_v38 = vmax.f32 %v1162_v36, 0.0  ;;  %v1165_v39 = vmax.f32 %v1163_v37, 0.0 }
 0x62c   :  { %v1970_v40 = vpack.c.bf16 %v1165_v39, %v1164_v38 }
 0x62e   :  { %1971 = vmatpush3.bf16.msra.mxu0 %v1970_v40 }
 0x631   :  { %1742 = vmatmul.mubr.msk.f32.vlgmr.msra.gmra.mrb[14].mxu0 %vm107_vm1, %v2213_v5  ;;  %v270_v5 = vsub.s32 0, %v269_v47 }
 0x633   :  { %v271_v49 = vrot.slane %v106_v48, %v270_v5 }
 0x704   :  { %v1232_v41 = vpop.f32.mrb[14].mxu0 }
 0x705   :  { %v1743_v42 = vpop.f32.mrb[15].mxu0  ;;  %1777 = vmatmul.mubr.f32.vlgmr.msra.gmra.mrb[0].mxu1 %v1232_v41 }
 0x7d8   :  { %v1318_v50 = vpop.f32.mrb[0].mxu1 }
 0x7d9   :  { %v1996_v51 = vadd.f32 %v1318_v50, %v271_v49  ;;  %v1778_v52 = vpop.f32.mrb[1].mxu1 }
 0x7db   :  { %1323 = vst [vmem:[#allocation5] sm:$0x3] %v1996_v51 }
 0x7dc   :  { %2037 = shalt.err (!%p2034_p9)
}
 0x7dd   :  { %s2038_s25 = scalar_lea.hbm %s2696_s26, 32 }
 0x7de   :  { %p2039_p10 = scmp.ne.s32.totalorder %s2696_s26, %s2038_s25  ;;  %p2042_p11 = scmp.lt.u32.totalorder %s2038_s25, %s2696_s26 }
 0x7e0   :  { %p2044_p12 = pnand %p2042_p11, %p2039_p10 }
 0x7e2   :  { %2047 = shalt.err (!%p2044_p12)
}
 0x7e3   :  { %1333 = dma.vmem_to_hbm [thread:$0]  %s1331_s2, 32, %s2696_s26, [#allocation3]  }
 0x7e4   :  { %2050 = dma.done.wait [#allocation3], 32  }
 0x7e5   :  { %2051 = vsyncadd [#allocation3], 4294967264 }
 0x7e6   :  { %1337 = vsyncpa [#allocation3], 1 }
 0x7e7   :  { %1338 = vsyncpa [#allocation4], 1 }

</bundles_post_ra>
